<compile_context>
chip_gen: v7x
topology: tpu7x:2x2x1
jax: 0.10.0
libtpu: 0.0.40
codegen_flags: <defaults>
</compile_context>

<pallas_src>
import functools

import jax
import jax.numpy as jnp
from jax import lax
from jax.experimental import pallas as pl
from jax.experimental.pallas import tpu as pltpu


def _round_up(x, m):
    return (x + m - 1) // m * m


def _softplus(x):
    # numerically stable softplus: log(1 + exp(x))
    return jnp.maximum(x, 0.0) + jnp.log1p(jnp.exp(-jnp.abs(x)))


def _actor_kernel(softmax_axis, d_actions, b_valid,
                  state_ref, w1_ref, w2_ref, b2_ref, wh_ref, bh_ref,
                  out_ref):
    """fc1 -> tanh -> fc2 -> tanh -> single fused head matmul -> one store."""
    cdt = w1_ref.dtype  # MXU compute dtype (bf16 by default), f32 accumulate

    # fc1 (bias folded into the ones-column of the padded state) -> tanh (f32)
    h = jnp.tanh(jnp.dot(state_ref[...], w1_ref[...],
                         preferred_element_type=jnp.float32))

    # fc2 -> tanh; bias is a lane-dense (1, H_pad) broadcast add in f32
    h = jnp.tanh(jnp.dot(h.astype(cdt), w2_ref[...],
                         preferred_element_type=jnp.float32) + b2_ref[...])

    # fused head: [pi | alpha | beta | zero-pad] in a single 128-wide matmul
    z = jnp.dot(h.astype(cdt), wh_ref[...],
                preferred_element_type=jnp.float32) + bh_ref[...]

    b, n_pad = z.shape
    col = lax.broadcasted_iota(jnp.int32, (b, n_pad), 1)
    is_pi = col < d_actions

    if softmax_axis == 0:
        # softmax over the batch axis (PyTorch default dim=0): per-column
        # reduction. Padded batch rows must not contribute, so mask them.
        row = lax.broadcasted_iota(jnp.int32, (b, n_pad), 0)
        valid_row = row < b_valid
        zl = jnp.where(valid_row, z, jnp.float32(-1e30))
        m = jnp.max(zl, axis=0, keepdims=True)
        e = jnp.where(valid_row, jnp.exp(zl - m), 0.0)
        denom = jnp.sum(e, axis=0, keepdims=True)
        sm = e * pl.reciprocal(denom, approx=True)
    else:
        # softmax over the action axis: mask out alpha/beta/padding columns.
        zl = jnp.where(is_pi, z, jnp.float32(-1e30))
        m = jnp.max(zl, axis=1, keepdims=True)
        e = jnp.where(is_pi, jnp.exp(zl - m), 0.0)
        denom = jnp.sum(e, axis=1, keepdims=True)
        sm = e * pl.reciprocal(denom, approx=True)

    # continuous heads: softplus(.) + 1 computed across the full 128 lanes
    sp = _softplus(z) + 1.0

    # single lane-dense (B_pad, 128) unmasked store; wrapper slices pi/alpha/beta
    out_ref[...] = jnp.where(is_pi, sm, sp)


def prepare_fused_params(params, compute_dtype=jnp.bfloat16):
    """Pad/fuse raw [in,out] weights into lane-dense kernel operands (once)."""
    w1, b1 = params["w1"], params["b1"]
    w2, b2 = params["w2"], params["b2"]
    wpi, bpi = params["wpi"], params["bpi"]
    wa, ba = params["wa"], params["ba"]
    wb, bb = params["wb"], params["bb"]

    S, H = w1.shape
    d = wpi.shape[1]
    c = wa.shape[1]

    S_pad = _round_up(S + 1, 128)          # +1 ones-column folds b1 into w1
    H_pad = _round_up(H, 128)
    N_pad = _round_up(d + 2 * c, 128)      # pi | alpha | beta fused head

    w1p = (jnp.zeros((S_pad, H_pad), jnp.float32)
           .at[:S, :H].set(w1)
           .at[S, :H].set(b1.reshape(-1)))
    w2p = jnp.zeros((H_pad, H_pad), jnp.float32).at[:H, :H].set(w2)
    b2p = jnp.zeros((1, H_pad), jnp.float32).at[0, :H].set(b2.reshape(-1))
    whp = (jnp.zeros((H_pad, N_pad), jnp.float32)
           .at[:H, :d].set(wpi)
           .at[:H, d:d + c].set(wa)
           .at[:H, d + c:d + 2 * c].set(wb))
    bhp = (jnp.zeros((1, N_pad), jnp.float32)
           .at[0, :d].set(bpi.reshape(-1))
           .at[0, d:d + c].set(ba.reshape(-1))
           .at[0, d + c:d + 2 * c].set(bb.reshape(-1)))

    return dict(
        w1=w1p.astype(compute_dtype),
        w2=w2p.astype(compute_dtype),
        b2=b2p,                             # biases stay f32 (added post-MXU)
        wh=whp.astype(compute_dtype),
        bh=bhp,
        dims=(S, S_pad, d, c),
        compute_dtype=compute_dtype,
    )


def hybrid_actor_forward(state, fused, dim=0):
    """Pallas forward of HybridActorNetwork. Returns (pi, [alpha, beta])."""
    S, S_pad, d, c = fused["dims"]
    cdt = fused["compute_dtype"]
    B = state.shape[0]
    B_pad = _round_up(max(B, 1), 8)         # sublane alignment
    N_pad = fused["wh"].shape[1]

    # Wrapper-side layout plumbing: lane-dense state + ones-column (fc1 bias).
    # Padded rows stay zero; they are masked out of the dim=0 softmax in-kernel
    # and sliced away below.
    state_p = (jnp.zeros((B_pad, S_pad), jnp.float32)
               .at[:B, :S].set(state)
               .at[:B, S].set(1.0)).astype(cdt)

    vmem = pl.BlockSpec(memory_space=pltpu.MemorySpace.VMEM)
    softmax_axis = 0 if dim == 0 else 1
    kernel = functools.partial(_actor_kernel, softmax_axis, d, B)

    # B is tiny; everything is a single VMEM-resident block (no grid needed).
    # If the batch ever grows, add a grid over B with weights mapped to (0, 0);
    # note dim=0 softmax would then need a two-pass (accumulate + finalize).
    out = pl.pallas_call(
        kernel,
        out_shape=jax.ShapeDtypeStruct((B_pad, N_pad), jnp.float32),
        in_specs=[vmem] * 6,
        out_specs=vmem,
    )(state_p, fused["w1"], fused["w2"], fused["b2"], fused["wh"], fused["bh"])

    pi = out[:B, :d]
    alpha = out[:B, d:d + c]
    beta = out[:B, d + c:d + 2 * c]
    return pi, [alpha, beta]


def init_params(key, state_dim, net_width, d_actions, c_actions):
    """Deterministic init mimicking nn.Linear's U(-1/sqrt(fan_in), 1/sqrt(fan_in))."""
    def linear(k, fan_in, fan_out):
        kw, kb = jax.random.split(k)
        bound = 1.0 / jnp.sqrt(jnp.float32(fan_in))
        w = jax.random.uniform(kw, (fan_in, fan_out), jnp.float32, -bound, bound)
        b = jax.random.uniform(kb, (1, fan_out), jnp.float32, -bound, bound)
        return w, b

    k1, k2, k3, k4, k5 = jax.random.split(key, 5)
    w1, b1 = linear(k1, state_dim, net_width)
    w2, b2 = linear(k2, net_width, net_width)
    wpi, bpi = linear(k3, net_width, d_actions)
    wa, ba = linear(k4, net_width, c_actions)
    wb, bb = linear(k5, net_width, c_actions)
    return dict(w1=w1, b1=b1, w2=w2, b2=b2,
                wpi=wpi, bpi=bpi, wa=wa, ba=ba, wb=wb, bb=bb)


def _reference_forward(state, p, dim=0, compute_dtype=jnp.float32):
    def dot(x, w):
        return jnp.dot(x.astype(compute_dtype), w.astype(compute_dtype),
                       preferred_element_type=jnp.float32)
    h = jnp.tanh(dot(state, p["w1"]) + p["b1"])
    h = jnp.tanh(dot(h, p["w2"]) + p["b2"])
    pi = jax.nn.softmax(dot(h, p["wpi"]) + p["bpi"], axis=dim)
    alpha = jax.nn.softplus(dot(h, p["wa"]) + p["ba"]) + 1.0
    beta = jax.nn.softplus(dot(h, p["wb"]) + p["bb"]) + 1.0
    return pi, alpha, beta


if __name__ == "__main__":
    # small shapes consistent with the module
    B = 8            # batch of states
    state_dim = 16
    net_width = 32
    d_actions = 6    # actions['discrete'].n
    c_actions = 4    # actions['continuous'].shape[0]

    key = jax.random.PRNGKey(0)
    k_param, k_state = jax.random.split(key)
    params = init_params(k_param, state_dim, net_width, d_actions, c_actions)
    state = jax.random.normal(k_state, (B, state_dim), jnp.float32)

    fused = prepare_fused_params(params, compute_dtype=jnp.bfloat16)

    # default dim=0 (softmax over the batch), same as the PyTorch forward
    pi, (alpha, beta) = hybrid_actor_forward(state, fused, dim=0)
    jax.block_until_ready((pi, alpha, beta))

    assert pi.shape == (B, d_actions)
    assert alpha.shape == (B, c_actions) and beta.shape == (B, c_actions)

    # tight check against a bf16-input reference (same MXU compute dtype)
    pi_b, a_b, b_b = _reference_forward(state, params, dim=0,
                                        compute_dtype=jnp.bfloat16)
    assert jnp.allclose(pi, pi_b, atol=5e-3, rtol=5e-3)
    assert jnp.allclose(alpha, a_b, atol=5e-3, rtol=5e-3)
    assert jnp.allclose(beta, b_b, atol=5e-3, rtol=5e-3)

    # looser sanity check against the pure-f32 reference
    pi_r, a_r, b_r = _reference_forward(state, params, dim=0)
    assert jnp.allclose(pi, pi_r, atol=3e-2, rtol=3e-2)
    assert jnp.allclose(alpha, a_r, atol=3e-2, rtol=3e-2)
    assert jnp.allclose(beta, b_r, atol=3e-2, rtol=3e-2)

    # also exercise dim=-1 (softmax over the action axis) and a ragged batch
    pi1, (a1, b1) = hybrid_actor_forward(state[:5], fused, dim=-1)
    jax.block_until_ready((pi1, a1, b1))
    pi1_r, a1_r, b1_r = _reference_forward(state[:5], params, dim=-1,
                                           compute_dtype=jnp.bfloat16)
    assert jnp.allclose(pi1, pi1_r, atol=5e-3, rtol=5e-3)
    assert jnp.allclose(a1, a1_r, atol=5e-3, rtol=5e-3)
    assert jnp.allclose(b1, b1_r, atol=5e-3, rtol=5e-3)

    print("KERNEL_OK")
</pallas_src>

<mosaic_0001>
module attributes {stable_mosaic.version = 11 : i64} {
  func.func @_actor_kernel(%arg0: memref<8x128xbf16, #tpu.memory_space<vmem>>, %arg1: memref<128x128xbf16, #tpu.memory_space<vmem>>, %arg2: memref<128x128xbf16, #tpu.memory_space<vmem>>, %arg3: memref<1x128xf32, #tpu.memory_space<vmem>>, %arg4: memref<128x128xbf16, #tpu.memory_space<vmem>>, %arg5: memref<1x128xf32, #tpu.memory_space<vmem>>, %arg6: memref<8x128xf32, #tpu.memory_space<vmem>>) attributes {dimension_semantics = [], scalar_prefetch = 0 : i64, scratch_operands = 0 : i64, tpu.core_type = #tpu.core_type<tc>} {
    %c0 = arith.constant 0 : index
    %c0_0 = arith.constant 0 : index
    %0 = vector.load %arg0[%c0, %c0_0] : memref<8x128xbf16, #tpu.memory_space<vmem>>, vector<8x128xbf16>
    %c0_1 = arith.constant 0 : index
    %c0_2 = arith.constant 0 : index
    %1 = vector.load %arg1[%c0_1, %c0_2] : memref<128x128xbf16, #tpu.memory_space<vmem>>, vector<128x128xbf16>
    %cst = arith.constant dense<0.000000e+00> : vector<8x128xf32>
    %2 = tpu.matmul %0, %1, %cst {dimension_numbers = #tpu.dot_dimension_numbers<[1], [0], [0], [1], [0, 0, 1, 1], [], []>} : vector<8x128xbf16>, vector<128x128xbf16>, vector<8x128xf32> -> vector<8x128xf32>
    %3 = math.tanh %2 : vector<8x128xf32>
    %4 = arith.truncf %3 : vector<8x128xf32> to vector<8x128xbf16>
    %c0_3 = arith.constant 0 : index
    %c0_4 = arith.constant 0 : index
    %5 = vector.load %arg2[%c0_3, %c0_4] : memref<128x128xbf16, #tpu.memory_space<vmem>>, vector<128x128xbf16>
    %cst_5 = arith.constant dense<0.000000e+00> : vector<8x128xf32>
    %6 = tpu.matmul %4, %5, %cst_5 {dimension_numbers = #tpu.dot_dimension_numbers<[1], [0], [0], [1], [0, 0, 1, 1], [], []>} : vector<8x128xbf16>, vector<128x128xbf16>, vector<8x128xf32> -> vector<8x128xf32>
    %c0_6 = arith.constant 0 : index
    %c0_7 = arith.constant 0 : index
    %7 = vector.load %arg3[%c0_6, %c0_7] : memref<1x128xf32, #tpu.memory_space<vmem>>, vector<1x128xf32>
    %8 = vector.broadcast %7 : vector<1x128xf32> to vector<8x128xf32>
    %9 = arith.addf %6, %8 : vector<8x128xf32>
    %10 = math.tanh %9 : vector<8x128xf32>
    %11 = arith.truncf %10 : vector<8x128xf32> to vector<8x128xbf16>
    %c0_8 = arith.constant 0 : index
    %c0_9 = arith.constant 0 : index
    %12 = vector.load %arg4[%c0_8, %c0_9] : memref<128x128xbf16, #tpu.memory_space<vmem>>, vector<128x128xbf16>
    %cst_10 = arith.constant dense<0.000000e+00> : vector<8x128xf32>
    %13 = tpu.matmul %11, %12, %cst_10 {dimension_numbers = #tpu.dot_dimension_numbers<[1], [0], [0], [1], [0, 0, 1, 1], [], []>} : vector<8x128xbf16>, vector<128x128xbf16>, vector<8x128xf32> -> vector<8x128xf32>
    %c0_11 = arith.constant 0 : index
    %c0_12 = arith.constant 0 : index
    %14 = vector.load %arg5[%c0_11, %c0_12] : memref<1x128xf32, #tpu.memory_space<vmem>>, vector<1x128xf32>
    %15 = vector.broadcast %14 : vector<1x128xf32> to vector<8x128xf32>
    %16 = arith.addf %13, %15 : vector<8x128xf32>
    %17 = tpu.iota {dimensions = array<i32: 1>} : vector<8x128xi32>
    %c6_i32 = arith.constant 6 : i32
    %18 = vector.broadcast %c6_i32 : i32 to vector<8x128xi32>
    %19 = arith.cmpi slt, %17, %18 : vector<8x128xi32>
    %20 = tpu.iota {dimensions = array<i32: 0>} : vector<8x128xi32>
    %c8_i32 = arith.constant 8 : i32
    %21 = vector.broadcast %c8_i32 : i32 to vector<8x128xi32>
    %22 = arith.cmpi slt, %20, %21 : vector<8x128xi32>
    %cst_13 = arith.constant -1.000000e+30 : f32
    %23 = vector.broadcast %cst_13 : f32 to vector<8x128xf32>
    %24 = arith.select %22, %16, %23 : vector<8x128xi1>, vector<8x128xf32>
    %cst_14 = arith.constant dense<0xFF800000> : vector<128xf32>
    %25 = vector.multi_reduction <maximumf>, %24, %cst_14 [0] : vector<8x128xf32> to vector<128xf32>
    %26 = vector.shape_cast %25 : vector<128xf32> to vector<1x128xf32>
    %27 = vector.broadcast %26 : vector<1x128xf32> to vector<8x128xf32>
    %28 = arith.subf %24, %27 : vector<8x128xf32>
    %29 = math.exp %28 : vector<8x128xf32>
    %cst_15 = arith.constant 0.000000e+00 : f32
    %30 = vector.broadcast %cst_15 : f32 to vector<8x128xf32>
    %31 = arith.select %22, %29, %30 : vector<8x128xi1>, vector<8x128xf32>
    %cst_16 = arith.constant dense<0.000000e+00> : vector<128xf32>
    %32 = vector.multi_reduction <add>, %31, %cst_16 [0] : vector<8x128xf32> to vector<128xf32>
    %33 = vector.shape_cast %32 : vector<128xf32> to vector<1x128xf32>
    %34 = tpu.reciprocal %33 {approx = true} : vector<1x128xf32> -> vector<1x128xf32>
    %35 = vector.broadcast %34 : vector<1x128xf32> to vector<8x128xf32>
    %36 = arith.mulf %31, %35 : vector<8x128xf32>
    %cst_17 = arith.constant 0.000000e+00 : f32
    %37 = vector.broadcast %cst_17 : f32 to vector<8x128xf32>
    %38 = arith.maximumf %16, %37 : vector<8x128xf32>
    %39 = math.absf %16 : vector<8x128xf32>
    %cst_18 = arith.constant 0.000000e+00 : f32
    %40 = vector.broadcast %cst_18 : f32 to vector<8x128xf32>
    %41 = arith.subf %40, %39 : vector<8x128xf32>
    %42 = math.exp %41 : vector<8x128xf32>
    %43 = math.log1p %42 : vector<8x128xf32>
    %44 = arith.addf %38, %43 : vector<8x128xf32>
    %cst_19 = arith.constant 1.000000e+00 : f32
    %45 = vector.broadcast %cst_19 : f32 to vector<8x128xf32>
    %46 = arith.addf %44, %45 : vector<8x128xf32>
    %47 = arith.select %19, %36, %46 : vector<8x128xi1>, vector<8x128xf32>
    %c0_20 = arith.constant 0 : index
    %c0_21 = arith.constant 0 : index
    %48 = vector.load %arg6[%c0_20, %c0_21] : memref<8x128xf32, #tpu.memory_space<vmem>>, vector<8x128xf32>
    tpu.vector_store %arg6[%c0_20, %c0_21], %47 {strides = array<i32>} : memref<8x128xf32, #tpu.memory_space<vmem>>, vector<8x128xf32>,
    return
  }
}

</mosaic_0001>

<bundles_post_ra>
// kernel: tpu_custom_call.1
= control target key start
LH: loop header
LB: loop body
LE: loop exit
PB: predicated region body
PF: predicated region fallthrough
CT: control target
= control target key end

     0   :  { %11 = vsyncpa [#allocation3], 0  ;;  %s894_s0 = inlined_call_operand.hbm [shape: bf16[8,128], index: 0, kind: input, shape index: {}]   ;;  %s895_s1 = inlined_call_operand.hbm [shape: bf16[128,128], index: 1, kind: input, shape index: {}]   ;;  %s896_s2 = inlined_call_operand.hbm [shape: bf16[128,128], index: 2, kind: input, shape index: {}]   ;;  %s897_s3 = inlined_call_operand.vmem [shape: f32[1,128], index: 3, kind: input, shape index: {}]   ;;  %s898_s4 = inlined_call_operand.hbm [shape: bf16[128,128], index: 4, kind: input, shape index: {}]   ;;  %s899_s5 = inlined_call_operand.vmem [shape: f32[1,128], index: 5, kind: input, shape index: {}]   ;;  %s900_s6 = inlined_call_operand.hbm [shape: f32[8,128], index: 6, kind: output, shape index: {}]  }
   0x1   :  { %12 = vsyncpa [#allocation6], 0 }
   0x2   :  { %13 = vsyncpa [#allocation9], 0 }
   0x3   :  { %14 = vsyncpa [#allocation4], 0  ;;  %s745_s21 = smov [#allocation5]   ;;  %s627_s25 = scalar_lea.hbm %s895_s1, 1024 }
   0x4   :  { %s30_s22 = sshll.u32 %s745_s21, 4  ;;  %p628_p0 = scmp.ne.s32.totalorder %s895_s1, %s627_s25  ;;  %s31_s22 = int_to_ptr.vmem [resolvable:$true] %s30_s22 }
   0x5   :  { %p631_p1 = scmp.lt.u32.totalorder %s627_s25, %s895_s1 }
   0x7   :  { %p633_p2 = pnand %p631_p1, %p628_p0 }
   0x9   :  { %636 = shalt.err (!%p633_p2)
}
   0xa   :  { %s637_s30 = scalar_lea.vmem %s31_s22, 1024  ;;  %p642_p4 = scmp.lt.s32.totalorder %s31_s22, %s31_s22 }
   0xb   :  { %p638_p3 = scmp.ne.s32.totalorder %s31_s22, %s637_s30  ;;  %p643_p5 = scmp.lt.s32.totalorder %s637_s30, %s637_s30 }
   0xd   :  { %p644_p6 = por %p643_p5, %p642_p4 }
   0xf   :  { %p645_p7 = pnand %p644_p6, %p638_p3 }
  0x11   :  { %648 = shalt.err (!%p645_p7)
}
  0x12   :  { %s746_s7 = smov 64   ;;  %s747_s8 = smov 4  }
  0x13   :  { %36 = dma.hbm_to_vmem [thread:$0]  %s895_s1, 1024, %s31_s22, [#allocation6], %s746_s7, %s746_s7, %s747_s8  }
  0x14   :  { %s748_s11 = smov [#allocation2]   ;;  %s749_s13 = smov [#allocation7]  }
  0x15   :  { %s21_s12 = sshll.u32 %s748_s11, 4  ;;  %s42_s14 = sshll.u32 %s749_s13, 4  ;;  %s22_s12 = int_to_ptr.vmem [resolvable:$true] %s21_s12  ;;  %s43_s14 = int_to_ptr.vmem [resolvable:$true] %s42_s14 }
  0x16   :  { %s649_s17 = scalar_lea.hbm %s894_s0, 64 }
  0x17   :  { %p650_p8 = scmp.ne.s32.totalorder %s894_s0, %s649_s17  ;;  %p653_p9 = scmp.lt.u32.totalorder %s649_s17, %s894_s0 }
  0x19   :  { %p655_p10 = pnand %p653_p9, %p650_p8 }
  0x1b   :  { %658 = shalt.err (!%p655_p10)
}
  0x1c   :  { %s659_s1 = scalar_lea.vmem %s22_s12, 64  ;;  %p664_p12 = scmp.lt.s32.totalorder %s22_s12, %s22_s12 }
  0x1d   :  { %p660_p11 = scmp.ne.s32.totalorder %s22_s12, %s659_s1  ;;  %p665_p13 = scmp.lt.s32.totalorder %s659_s1, %s659_s1 }
  0x1f   :  { %p666_p0 = por %p665_p13, %p664_p12 }
  0x21   :  { %p667_p1 = pnand %p666_p0, %p660_p11 }
  0x23   :  { %670 = shalt.err (!%p667_p1)
}
  0x24   :  { %24 = dma.hbm_to_vmem [thread:$0]  %s894_s0, 64, %s22_s12, [#allocation3]  }
  0x25   :  { %s671_s26 = scalar_lea.hbm %s896_s2, 1024 }
  0x26   :  { %p672_p2 = scmp.ne.s32.totalorder %s896_s2, %s671_s26  ;;  %p675_p3 = scmp.lt.u32.totalorder %s671_s26, %s896_s2 }
  0x28   :  { %p677_p4 = pnand %p675_p3, %p672_p2 }
  0x2a   :  { %680 = shalt.err (!%p677_p4)
}
  0x2b   :  { %s681_s9 = scalar_lea.vmem %s43_s14, 1024  ;;  %p686_p6 = scmp.lt.s32.totalorder %s43_s14, %s43_s14 }
  0x2c   :  { %p682_p5 = scmp.ne.s32.totalorder %s43_s14, %s681_s9  ;;  %p687_p7 = scmp.lt.s32.totalorder %s681_s9, %s681_s9 }
  0x2e   :  { %p688_p8 = por %p687_p7, %p686_p6 }
  0x30   :  { %p689_p9 = pnand %p688_p8, %p682_p5 }
  0x32   :  { %692 = shalt.err (!%p689_p9)
}
  0x33   :  { %48 = dma.hbm_to_vmem [thread:$0]  %s896_s2, 1024, %s43_s14, [#allocation6], %s746_s7, %s746_s7, %s747_s8  }
  0x34   :  { %s750_s11 = smov [#allocation8]   ;;  %s693_s16 = scalar_lea.hbm %s898_s4, 1024 }
  0x35   :  { %s56_s12 = sshll.u32 %s750_s11, 4  ;;  %p694_p10 = scmp.ne.s32.totalorder %s898_s4, %s693_s16  ;;  %s57_s12 = int_to_ptr.vmem [resolvable:$true] %s56_s12 }
  0x36   :  { %p697_p11 = scmp.lt.u32.totalorder %s693_s16, %s898_s4 }
  0x38   :  { %p699_p12 = pnand %p697_p11, %p694_p10 }
  0x3a   :  { %702 = shalt.err (!%p699_p12)
}
  0x3b   :  { %s703_s21 = scalar_lea.vmem %s57_s12, 1024  ;;  %p708_p0 = scmp.lt.s32.totalorder %s57_s12, %s57_s12 }
  0x3c   :  { %p704_p13 = scmp.ne.s32.totalorder %s57_s12, %s703_s21  ;;  %p709_p1 = scmp.lt.s32.totalorder %s703_s21, %s703_s21 }
  0x3e   :  { %p710_p2 = por %p709_p1, %p708_p0 }
  0x40   :  { %p711_p3 = pnand %p710_p2, %p704_p13 }
  0x42   :  { %714 = shalt.err (!%p711_p3)
}
  0x43   :  { %62 = dma.hbm_to_vmem [thread:$0]  %s898_s4, 1024, %s57_s12, [#allocation9], %s746_s7, %s746_s7, %s747_s8  }
  0x44   :  { %737 = dma.done.wait [#allocation3], 64  }
  0x45   :  { %738 = vsyncadd [#allocation3], 4294967232 }
  0x46   :  { %739 = dma.done.wait [#allocation6], 2048  }
  0x47   :  { %740 = vsyncadd [#allocation6], 4294965248 }
  0x48   :  { %741 = dma.done.wait [#allocation9], 1024  }
  0x49   :  { %742 = vsyncadd [#allocation9], 4294966272  ;;  %v751_v0 = vmov 0.0   ;;  %vm752_vm0 = vmmov 0   ;;  %v591_v1 = vld [vmem:[#allocation5] sm:$0xff]   ;;  %v592_v2 = vld [vmem:[#allocation5 + $0x8] sm:$0xff]  }
  0x4a   :  { %522 = vmatprep.subr.bf16.mxu0 %v751_v0  ;;  %538 = vmatprep.mubr.msk.bf16.mxu0 %vm752_vm0, %v751_v0  ;;  %v593_v3 = vld [vmem:[#allocation5 + $0x10] sm:$0xff]   ;;  %v599_v4 = vld [vmem:[#allocation7] sm:$0xff]   ;;  %v594_v5 = vld [vmem:[#allocation5 + $0x18] sm:$0xff]  }
  0x4b   :  { %542 = vmatprep.subr.bf16.mxu1 %v751_v0  ;;  %558 = vmatprep.mubr.msk.bf16.mxu1 %vm752_vm0, %v751_v0  ;;  %v600_v6 = vld [vmem:[#allocation7 + $0x8] sm:$0xff]   ;;  %v595_v7 = vld [vmem:[#allocation5 + $0x20] sm:$0xff]   ;;  %v601_v8 = vld [vmem:[#allocation7 + $0x10] sm:$0xff]  }
  0x4c   :  { %523 = vmatpush3.bf16.msra.mxu0 %v591_v1  ;;  %543 = vmatpush3.bf16.msra.mxu1 %v599_v4  ;;  %v596_v9 = vld [vmem:[#allocation5 + $0x28] sm:$0xff]   ;;  %v602_v10 = vld [vmem:[#allocation7 + $0x18] sm:$0xff]   ;;  %v597_v11 = vld [vmem:[#allocation5 + $0x30] sm:$0xff]  }
  0x4d   :  { %524 = vmatprep.subr.bf16.mxu0 %v751_v0  ;;  %544 = vmatprep.subr.bf16.mxu1 %v751_v0  ;;  %v603_v12 = vld [vmem:[#allocation7 + $0x20] sm:$0xff]   ;;  %v598_v13 = vld [vmem:[#allocation5 + $0x38] sm:$0xff]   ;;  %v604_v15 = vld [vmem:[#allocation7 + $0x28] sm:$0xff]  }
  0x4e   :  { %v78_v14 = vld [vmem:[#allocation2] sm:$0xf]  ;;  %v605_v16 = vld [vmem:[#allocation7 + $0x30] sm:$0xff]   ;;  %v607_v18 = vld [vmem:[#allocation8] sm:$0xff]  }
  0x4f   :  { %v606_v17 = vld [vmem:[#allocation7 + $0x38] sm:$0xff]   ;;  %v608_v19 = vld [vmem:[#allocation8 + $0x8] sm:$0xff]   ;;  %v609_v20 = vld [vmem:[#allocation8 + $0x10] sm:$0xff]  }
  0x50   :  { %525 = vmatpush3.bf16.msra.mxu0 %v592_v2  ;;  %545 = vmatpush3.bf16.msra.mxu1 %v600_v6  ;;  %v610_v21 = vld [vmem:[#allocation8 + $0x18] sm:$0xff]   ;;  %v611_v28 = vld [vmem:[#allocation8 + $0x20] sm:$0xff]   ;;  %v612_v29 = vld [vmem:[#allocation8 + $0x28] sm:$0xff]  }
  0x51   :  { %526 = vmatprep.subr.bf16.mxu0 %v751_v0  ;;  %546 = vmatprep.subr.bf16.mxu1 %v751_v0  ;;  %v613_v30 = vld [vmem:[#allocation8 + $0x30] sm:$0xff]   ;;  %v614_v31 = vld [vmem:[#allocation8 + $0x38] sm:$0xff]  }
  0x52   :  { %v477_v32 = vld [vmem:[%s897_s3] ss:$0 sm:$0xff]  ;;  %s753_s3 = smov [#allocation10]  }
  0x53   :  { %v486_v40 = vld [vmem:[%s899_s5] ss:$0 sm:$0xff]  ;;  %s458_s5 = sshll.u32 %s753_s3, 4  ;;  %s459_s5 = int_to_ptr.vmem [resolvable:$true] %s458_s5 }
  0x54   :  { %527 = vmatpush3.bf16.msra.mxu0 %v593_v3  ;;  %547 = vmatpush3.bf16.msra.mxu1 %v601_v8  ;;  %s715_s22 = scalar_lea.vmem %s459_s5, 128  ;;  %p720_p5 = scmp.lt.s32.totalorder %s459_s5, %s459_s5 }
  0x55   :  { %528 = vmatprep.subr.bf16.mxu0 %v751_v0  ;;  %548 = vmatprep.subr.bf16.mxu1 %v751_v0  ;;  %p716_p4 = scmp.ne.s32.totalorder %s459_s5, %s715_s22  ;;  %p721_p6 = scmp.lt.s32.totalorder %s715_s22, %s715_s22 }
  0x57   :  { %p722_p7 = por %p721_p6, %p720_p5 }
  0x58   :  { %529 = vmatpush3.bf16.msra.mxu0 %v594_v5  ;;  %549 = vmatpush3.bf16.msra.mxu1 %v602_v10 }
  0x59   :  { %530 = vmatprep.subr.bf16.mxu0 %v751_v0  ;;  %550 = vmatprep.subr.bf16.mxu1 %v751_v0  ;;  %p723_p8 = pnand %p722_p7, %p716_p4 }
  0x5c   :  { %531 = vmatpush3.bf16.msra.mxu0 %v595_v7  ;;  %551 = vmatpush3.bf16.msra.mxu1 %v603_v12  ;;  %v409_v7 = vlaneseq }
  0x5d   :  { %532 = vmatprep.subr.bf16.mxu0 %v751_v0  ;;  %552 = vmatprep.subr.bf16.mxu1 %v751_v0 }
  0x60   :  { %533 = vmatpush3.bf16.msra.mxu0 %v596_v9  ;;  %553 = vmatpush3.bf16.msra.mxu1 %v604_v15 }
  0x61   :  { %534 = vmatprep.subr.bf16.mxu0 %v751_v0  ;;  %554 = vmatprep.subr.bf16.mxu1 %v751_v0 }
  0x64   :  { %535 = vmatpush3.bf16.msra.mxu0 %v597_v11  ;;  %555 = vmatpush3.bf16.msra.mxu1 %v605_v16  ;;  %v410_v11 = vand.u32 127, %v409_v7 }
  0x65   :  { %536 = vmatprep.subr.bf16.mxu0 %v751_v0  ;;  %556 = vmatprep.subr.bf16.mxu1 %v751_v0 }
  0x66   :  { %vm411_vm2 = vcmp.lt.s32.totalorder %v410_v11, 6 }
  0x68   :  { %537 = vmatpush3.bf16.msra.mxu0 %v598_v13  ;;  %557 = vmatpush3.bf16.msra.mxu1 %v606_v17 }
  0x69   :  { %562 = vmatprep.subr.bf16.mxu0 %v751_v0 }
  0x6b   :  { %539 = vmatmul.mubr.bf16.vlgmr.msra.gmra.mrb[0].mxu0 %v78_v14 }
  0x6c   :  { %578 = vmatprep.mubr.msk.bf16.mxu0 %vm752_vm0, %v751_v0  ;;  %563 = vmatpush3.bf16.msra.mxu0 %v607_v18 }
  0x6d   :  { %564 = vmatprep.subr.bf16.mxu0 %v751_v0 }
  0x70   :  { %565 = vmatpush3.bf16.msra.mxu0 %v608_v19 }
  0x71   :  { %566 = vmatprep.subr.bf16.mxu0 %v751_v0 }
  0x74   :  { %567 = vmatpush3.bf16.msra.mxu0 %v609_v20 }
  0x75   :  { %568 = vmatprep.subr.bf16.mxu0 %v751_v0 }
  0x78   :  { %569 = vmatpush3.bf16.msra.mxu0 %v610_v21 }
  0x79   :  { %570 = vmatprep.subr.bf16.mxu0 %v751_v0 }
  0x7c   :  { %571 = vmatpush3.bf16.msra.mxu0 %v611_v28 }
  0x7d   :  { %572 = vmatprep.subr.bf16.mxu0 %v751_v0 }
  0x80   :  { %573 = vmatpush3.bf16.msra.mxu0 %v612_v29 }
  0x81   :  { %574 = vmatprep.subr.bf16.mxu0 %v751_v0 }
  0x84   :  { %575 = vmatpush3.bf16.msra.mxu0 %v613_v30 }
  0x85   :  { %576 = vmatprep.subr.bf16.mxu0 %v751_v0 }
  0x88   :  { %577 = vmatpush3.bf16.msra.mxu0 %v614_v31 }
 0x13e   :  { %v177_v22 = vpop.f32.mrb[0].mxu0 }
 0x13f   :  { %615 = vtanh.f32 %v177_v22  ;;  %v540_v23 = vpop.f32.mrb[1].mxu0 }
 0x140   :  { %v180_v24 = vpop.f32.mrb[2].mxu0 }
 0x141   :  { %v541_v25 = vpop.f32.mrb[3].mxu0 }
 0x149   :  { %v616_v26 = vpop.eup %615 }
 0x14a   :  { %v184_v27 = vpack.c.bf16 %v616_v26, %v616_v26 }
 0x14c   :  { %559 = vmatmul.mubr.bf16.vlgmr.msra.gmra.mrb[0].mxu1 %v184_v27 }
 0x21f   :  { %v290_v33 = vpop.f32.mrb[0].mxu1 }
 0x220   :  { %v291_v34 = vadd.f32 %v477_v32, %v290_v33  ;;  %v560_v35 = vpop.f32.mrb[1].mxu1 }
 0x221   :  { %v293_v36 = vpop.f32.mrb[2].mxu1 }
 0x222   :  { %617 = vtanh.f32 %v291_v34  ;;  %v561_v37 = vpop.f32.mrb[3].mxu1 }
 0x22c   :  { %v618_v38 = vpop.eup %617 }
 0x22d   :  { %v297_v39 = vpack.c.bf16 %v618_v38, %v618_v38 }
 0x22f   :  { %579 = vmatmul.mubr.bf16.vlgmr.msra.gmra.mrb[4].mxu0 %v297_v39 }
 0x302   :  { %v403_v41 = vpop.f32.mrb[4].mxu0 }
 0x303   :  { %v404_v42 = vadd.f32 %v486_v40, %v403_v41  ;;  %v580_v43 = vpop.f32.mrb[5].mxu0 }
 0x304   :  { %v406_v44 = vpop.f32.mrb[6].mxu0 }
 0x305   :  { %v416_v45 = vrot.slane %v404_v42, 4  ;;  %v435_v46 = vand.u32 2147483647, %v404_v42  ;;  %v581_v47 = vpop.f32.mrb[7].mxu0  ;;  %v434_v10 = vmax.f32 %v404_v42, 0.0 }
 0x307   :  { %v417_v48 = vmax.f32 %v404_v42, %v416_v45  ;;  %v436_v49 = vsub.f32 0.0, %v435_v46 }
 0x309   :  { %v418_v50 = vrot.slane %v417_v48, 2  ;;  %v437_v51 = vmul.f32 1.442695, %v436_v49 }
 0x30b   :  { %v419_v52 = vmax.f32 %v417_v48, %v418_v50  ;;  %619 = vpow2.f32 %v437_v51 }
 0x30d   :  { %v420_v53 = vrot.slane %v419_v52, 1 }
 0x30f   :  { %v421_v54 = vmax.f32 %v419_v52, %v420_v53 }
 0x311   :  { %v422_v55 = vsub.f32 %v404_v42, %v421_v54 }
 0x313   :  { %v423_v56 = vmul.f32 1.442695, %v422_v55 }
 0x315   :  { %621 = vpow2.f32 %v423_v56  ;;  %v620_v57 = vpop.eup %619 }
 0x316   :  { %v439_v58 = vadd.f32 1.0, %v620_v57  ;;  %v442_v0 = vmul.f32 -0.5, %v620_v57  ;;  %v445_v5 = vand.u32 2147483647, %v620_v57 }
 0x318   :  { %623 = vlog2.f32 %v439_v58  ;;  %v443_v4 = vadd.f32 1.0, %v442_v0  ;;  %vm446_vm1 = vcmp.lt.f32.partialorder %v445_v5, 0.0004427343 }
 0x31a   :  { %v444_v8 = vmul.f32 %v620_v57, %v443_v4 }
 0x31f   :  { %v622_v59 = vpop.eup %621 }
 0x320   :  { %v426_v60 = vrot.slane %v622_v59, 4 }
 0x322   :  { %v427_v61 = vadd.f32 %v622_v59, %v426_v60  ;;  %v624_v2 = vpop.eup %623 }
 0x323   :  { %v441_v6 = vmul.f32 0.6931472, %v624_v2 }
 0x324   :  { %v428_v62 = vrot.slane %v427_v61, 2 }
 0x325   :  { %v447_v9 = vsel %vm446_vm1, %v444_v8, %v441_v6 }
 0x326   :  { %v429_v63 = vadd.f32 %v428_v62, %v427_v61  ;;  %v448_v12 = vadd.f32 %v447_v9, %v434_v10 }
 0x328   :  { %v430_v1 = vrot.slane %v429_v63, 1  ;;  %v449_v15 = vadd.f32 1.0, %v448_v12 }
 0x32a   :  { %v431_v3 = vadd.f32 %v430_v1, %v429_v63 }
 0x32c   :  { %625 = vrcp.f32 %v431_v3 }
 0x336   :  { %v626_v13 = vpop.eup %625 }
 0x337   :  { %v433_v14 = vmul.f32 %v626_v13, %v622_v59 }
 0x339   :  { %v450_v16 = vsel %vm411_vm2, %v433_v14, %v449_v15 }
 0x33a   :  { %451 = vst [vmem:[#allocation10] sm:$0xff] %v450_v16 }
 0x33b   :  { %726 = shalt.err (!%p723_p8)
}
 0x33c   :  { %s727_s25 = scalar_lea.hbm %s900_s6, 128 }
 0x33d   :  { %p728_p9 = scmp.ne.s32.totalorder %s900_s6, %s727_s25  ;;  %p731_p10 = scmp.lt.u32.totalorder %s727_s25, %s900_s6 }
 0x33f   :  { %p733_p11 = pnand %p731_p10, %p728_p9 }
 0x341   :  { %736 = shalt.err (!%p733_p11)
}
 0x342   :  { %461 = dma.vmem_to_hbm [thread:$0]  %s459_s5, 128, %s900_s6, [#allocation4]  }
 0x343   :  { %743 = dma.done.wait [#allocation4], 128  }
 0x344   :  { %744 = vsyncadd [#allocation4], 4294967168 }
 0x345   :  { %465 = vsyncpa [#allocation3], 1 }
 0x346   :  { %466 = vsyncpa [#allocation6], 1 }
 0x347   :  { %467 = vsyncpa [#allocation9], 1 }
 0x348   :  { %468 = vsyncpa [#allocation4], 1 }

</bundles_post_ra>
